<compile_context>
chip_gen: v7x
topology: tpu7x:2x2x1
jax: 0.10.0
libtpu: 0.0.40
codegen_flags: <defaults>
</compile_context>

<pallas_src>
import functools

import jax
import jax.numpy as jnp
from jax.experimental import pallas as pl
from jax.experimental.pallas import tpu as pltpu

LANE = 128      # vreg lane width: last dims should be multiples of 128
SUBLANE = 8     # f32 sublane count: batch tile should be a multiple of 8


def _round_up(n, m):
    return ((n + m - 1) // m) * m


def decoder_kernel(x_ref, w1_ref, b1_ref, w2_ref, b2_ref, o_ref):
    # x_ref: (TB, Lp), w1_ref: (Lp, Hp), b1_ref: (1, Hp),
    # w2_ref: (Hp, Op), b2_ref: (1, Op), o_ref: (TB, Op)
    x = x_ref[...]
    h = jnp.dot(x, w1_ref[...], preferred_element_type=jnp.float32) + b1_ref[...]
    h = jnp.maximum(h, 0.0)  # relu (VPU)
    y = jnp.dot(h, w2_ref[...], preferred_element_type=jnp.float32) + b2_ref[...]
    # sigmoid = 1 / (1 + exp(-y)); exp and approx reciprocal both go to the EUP,
    # keeping VALU bundle slots free.
    o_ref[...] = pl.reciprocal(1.0 + jnp.exp(-y), approx=True).astype(o_ref.dtype)


@functools.partial(jax.jit, static_argnames=("block_b",))
def decoder_forward(x, w1, b1, w2, b2, *, block_b=SUBLANE):
    """y = sigmoid(relu(x @ w1 + b1) @ w2 + b2), weights stored (in, out)."""
    B, L = x.shape
    H = w1.shape[1]
    O = w2.shape[1]

    # Lane-dense padding of feature dims + sublane-aligned batch tile.
    Lp, Hp, Op = _round_up(L, LANE), _round_up(H, LANE), _round_up(O, LANE)
    Bp = _round_up(B, block_b)

    xp = jnp.pad(x, ((0, Bp - B), (0, Lp - L)))
    w1p = jnp.pad(w1, ((0, Lp - L), (0, Hp - H)))
    b1p = jnp.pad(b1, ((0, 0), (0, Hp - H)))
    w2p = jnp.pad(w2, ((0, Hp - H), (0, Op - O)))
    b2p = jnp.pad(b2, ((0, 0), (0, Op - O)))
    # Zero padding is semantics-preserving: padded hidden cols stay 0 through
    # relu, padded output cols are sliced off below.

    cost = pl.CostEstimate(
        flops=2 * Bp * (Lp * Hp + Hp * Op),
        transcendentals=Bp * Op,
        bytes_accessed=4 * (Bp * Lp + Lp * Hp + Hp + Hp * Op + Op + Bp * Op),
    )

    out = pl.pallas_call(
        decoder_kernel,
        out_shape=jax.ShapeDtypeStruct((Bp, Op), jnp.float32),
        grid=(Bp // block_b,),
        in_specs=[
            pl.BlockSpec((block_b, Lp), lambda i: (i, 0)),  # batch-tiled activations
            pl.BlockSpec((Lp, Hp), lambda i: (0, 0)),       # VMEM-resident weights
            pl.BlockSpec((1, Hp), lambda i: (0, 0)),
            pl.BlockSpec((Hp, Op), lambda i: (0, 0)),
            pl.BlockSpec((1, Op), lambda i: (0, 0)),
        ],
        out_specs=pl.BlockSpec((block_b, Op), lambda i: (i, 0)),
        compiler_params=pltpu.CompilerParams(
            dimension_semantics=("parallel",),  # shard batch tiles across TCs (v7x)
        ),
        cost_estimate=cost,
    )(xp, w1p, b1p, w2p, b2p)

    return out[:B, :O]


def init_linear(key, in_features, out_features):
    # Mirrors PyTorch nn.Linear default init: U(-1/sqrt(in), 1/sqrt(in)).
    kw, kb = jax.random.split(key)
    bound = 1.0 / (in_features ** 0.5)
    w = jax.random.uniform(kw, (in_features, out_features), jnp.float32, -bound, bound)
    b = jax.random.uniform(kb, (1, out_features), jnp.float32, -bound, bound)
    return w, b


if __name__ == "__main__":
    latent_dim, hidden_dim, output_dim = 8, 32, 64
    batch = 4

    key = jax.random.PRNGKey(0)
    k_x, k_l1, k_l2 = jax.random.split(key, 3)

    x = jax.random.normal(k_x, (batch, latent_dim), jnp.float32)
    w1, b1 = init_linear(k_l1, latent_dim, hidden_dim)
    w2, b2 = init_linear(k_l2, hidden_dim, output_dim)

    out = decoder_forward(x, w1, b1, w2, b2)
    out = jax.block_until_ready(out)

    # Pure-JAX reference of the forward semantics.
    h_ref = jnp.maximum(x @ w1 + b1, 0.0)
    ref = jax.nn.sigmoid(h_ref @ w2 + b2)
    assert out.shape == (batch, output_dim)
    # Slightly looser tolerance: sigmoid uses the EUP approx reciprocal.
    assert jnp.allclose(out, ref, atol=2e-3, rtol=2e-3), float(jnp.max(jnp.abs(out - ref)))

    print("KERNEL_OK")
</pallas_src>

<mosaic_0001>
module attributes {stable_mosaic.version = 11 : i64} {
  func.func @decoder_kernel(%arg0: i32, %arg1: memref<8x128xf32, #tpu.memory_space<vmem>>, %arg2: memref<128x128xf32, #tpu.memory_space<vmem>>, %arg3: memref<1x128xf32, #tpu.memory_space<vmem>>, %arg4: memref<128x128xf32, #tpu.memory_space<vmem>>, %arg5: memref<1x128xf32, #tpu.memory_space<vmem>>, %arg6: memref<8x128xf32, #tpu.memory_space<vmem>>) attributes {dimension_semantics = [#tpu.dimension_semantics<parallel>], iteration_bounds = array<i64: 1>, scalar_prefetch = 0 : i64, scratch_operands = 0 : i64, tpu.core_type = #tpu.core_type<tc>, window_params = [{transform_indices = @transform_0, window_bounds = array<i64: 8, 128>}, {pipeline_mode = #tpu.pipeline_mode<synchronous>, transform_indices = @transform_1, window_bounds = array<i64: 128, 128>}, {pipeline_mode = #tpu.pipeline_mode<synchronous>, transform_indices = @transform_2, window_bounds = array<i64: 1, 128>}, {pipeline_mode = #tpu.pipeline_mode<synchronous>, transform_indices = @transform_3, window_bounds = array<i64: 128, 128>}, {pipeline_mode = #tpu.pipeline_mode<synchronous>, transform_indices = @transform_4, window_bounds = array<i64: 1, 128>}, {transform_indices = @transform_5, window_bounds = array<i64: 8, 128>}]} {
    %c0 = arith.constant 0 : index
    %c0_0 = arith.constant 0 : index
    %0 = vector.load %arg1[%c0, %c0_0] : memref<8x128xf32, #tpu.memory_space<vmem>>, vector<8x128xf32>
    %c0_1 = arith.constant 0 : index
    %c0_2 = arith.constant 0 : index
    %1 = vector.load %arg2[%c0_1, %c0_2] : memref<128x128xf32, #tpu.memory_space<vmem>>, vector<128x128xf32>
    %cst = arith.constant dense<0.000000e+00> : vector<8x128xf32>
    %2 = tpu.matmul %0, %1, %cst {dimension_numbers = #tpu.dot_dimension_numbers<[1], [0], [0], [1], [0, 0, 1, 1], [], []>} : vector<8x128xf32>, vector<128x128xf32>, vector<8x128xf32> -> vector<8x128xf32>
    %c0_3 = arith.constant 0 : index
    %c0_4 = arith.constant 0 : index
    %3 = vector.load %arg3[%c0_3, %c0_4] : memref<1x128xf32, #tpu.memory_space<vmem>>, vector<1x128xf32>
    %4 = vector.broadcast %3 : vector<1x128xf32> to vector<8x128xf32>
    %5 = arith.addf %2, %4 : vector<8x128xf32>
    %cst_5 = arith.constant 0.000000e+00 : f32
    %6 = vector.broadcast %cst_5 : f32 to vector<8x128xf32>
    %7 = arith.maximumf %5, %6 : vector<8x128xf32>
    %c0_6 = arith.constant 0 : index
    %c0_7 = arith.constant 0 : index
    %8 = vector.load %arg4[%c0_6, %c0_7] : memref<128x128xf32, #tpu.memory_space<vmem>>, vector<128x128xf32>
    %cst_8 = arith.constant dense<0.000000e+00> : vector<8x128xf32>
    %9 = tpu.matmul %7, %8, %cst_8 {dimension_numbers = #tpu.dot_dimension_numbers<[1], [0], [0], [1], [0, 0, 1, 1], [], []>} : vector<8x128xf32>, vector<128x128xf32>, vector<8x128xf32> -> vector<8x128xf32>
    %c0_9 = arith.constant 0 : index
    %c0_10 = arith.constant 0 : index
    %10 = vector.load %arg5[%c0_9, %c0_10] : memref<1x128xf32, #tpu.memory_space<vmem>>, vector<1x128xf32>
    %11 = vector.broadcast %10 : vector<1x128xf32> to vector<8x128xf32>
    %12 = arith.addf %9, %11 : vector<8x128xf32>
    %cst_11 = arith.constant 0.000000e+00 : f32
    %13 = vector.broadcast %cst_11 : f32 to vector<8x128xf32>
    %14 = arith.subf %13, %12 : vector<8x128xf32>
    %15 = math.exp %14 : vector<8x128xf32>
    %cst_12 = arith.constant 1.000000e+00 : f32
    %16 = vector.broadcast %cst_12 : f32 to vector<8x128xf32>
    %17 = arith.addf %16, %15 : vector<8x128xf32>
    %18 = tpu.reciprocal %17 {approx = true} : vector<8x128xf32> -> vector<8x128xf32>
    %c0_13 = arith.constant 0 : index
    %c0_14 = arith.constant 0 : index
    %19 = vector.load %arg6[%c0_13, %c0_14] : memref<8x128xf32, #tpu.memory_space<vmem>>, vector<8x128xf32>
    tpu.vector_store %arg6[%c0_13, %c0_14], %18 {strides = array<i32>} : memref<8x128xf32, #tpu.memory_space<vmem>>, vector<8x128xf32>,
    return
  }
  func.func @transform_0(%arg0: i32) -> (i32, i32) {
    %c0_i32 = arith.constant 0 : i32
    %c0_i32_0 = arith.constant 0 : i32
    return %arg0, %c0_i32 : i32, i32
  }
  func.func @transform_1(%arg0: i32) -> (i32, i32) {
    %c0_i32 = arith.constant 0 : i32
    %c0_i32_0 = arith.constant 0 : i32
    %c0_i32_1 = arith.constant 0 : i32
    return %c0_i32, %c0_i32_0 : i32, i32
  }
  func.func @transform_2(%arg0: i32) -> (i32, i32) {
    %c0_i32 = arith.constant 0 : i32
    %c0_i32_0 = arith.constant 0 : i32
    %c0_i32_1 = arith.constant 0 : i32
    return %c0_i32, %c0_i32_0 : i32, i32
  }
  func.func @transform_3(%arg0: i32) -> (i32, i32) {
    %c0_i32 = arith.constant 0 : i32
    %c0_i32_0 = arith.constant 0 : i32
    %c0_i32_1 = arith.constant 0 : i32
    return %c0_i32, %c0_i32_0 : i32, i32
  }
  func.func @transform_4(%arg0: i32) -> (i32, i32) {
    %c0_i32 = arith.constant 0 : i32
    %c0_i32_0 = arith.constant 0 : i32
    %c0_i32_1 = arith.constant 0 : i32
    return %c0_i32, %c0_i32_0 : i32, i32
  }
  func.func @transform_5(%arg0: i32) -> (i32, i32) {
    %c0_i32 = arith.constant 0 : i32
    %c0_i32_0 = arith.constant 0 : i32
    return %arg0, %c0_i32 : i32, i32
  }
}

</mosaic_0001>

<bundles_post_ra>
// kernel: decoder_forward.1
= control target key start
LH: loop header
LB: loop body
LE: loop exit
PB: predicated region body
PF: predicated region fallthrough
CT: control target
= control target key end

     0   :  { %v379_v0 = vmov 0.0|0.0   ;;  %vm380_vm0 = vmmov 0   ;;  %v381_v4 = vmov 0.0   ;;  %s536_s1 = inlined_call_operand.vmem [shape: f32[128,128], index: 1, kind: input, shape index: {}]   ;;  %s537_s3 = inlined_call_operand.vmem [shape: f32[128,128], index: 3, kind: input, shape index: {}]   ;;  %s538_s0 = inlined_call_operand.vmem [shape: f32[8,128], index: 0, kind: input, shape index: {}]   ;;  %s539_s2 = inlined_call_operand.vmem [shape: f32[1,128], index: 2, kind: input, shape index: {}]   ;;  %s540_s4 = inlined_call_operand.vmem [shape: f32[1,128], index: 4, kind: input, shape index: {}]   ;;  %s541_s5 = inlined_call_operand.vmem [shape: f32[8,128], index: 5, kind: output, shape index: {}]  }
   0x1   :  { %324 = vmatprep.subr.bf16.mxu0 %v379_v0  ;;  %v21_v1 = vld [vmem:[%s536_s1] sm:$0xff]  ;;  %v22_v2 = vld [vmem:[%s536_s1 + $0x8] sm:$0xff]  ;;  %v23_v3 = vld [vmem:[%s536_s1 + $0x10] sm:$0xff]  ;;  %286 = vmatprep.mubr.msk.f32.mxu0 %vm380_vm0, %v381_v4 }
   0x2   :  { %v325_v5 = vpack.c.bf16 %v22_v2, %v21_v1  ;;  %v24_v6 = vld [vmem:[%s536_s1 + $0x18] sm:$0xff]  ;;  %348 = vmatprep.subr.bf16.mxu1 %v379_v0  ;;  %321 = vmatprep.mubr.msk.f32.mxu1 %vm380_vm0, %v381_v4  ;;  %v25_v8 = vld [vmem:[%s536_s1 + $0x20] sm:$0xff]  ;;  %v26_v9 = vld [vmem:[%s536_s1 + $0x28] sm:$0xff] }
   0x3   :  { %v328_v7 = vpack.c.bf16 %v24_v6, %v23_v3  ;;  %v115_v10 = vld [vmem:[%s537_s3] sm:$0xff]  ;;  %v116_v11 = vld [vmem:[%s537_s3 + $0x8] sm:$0xff]  ;;  %v117_v12 = vld [vmem:[%s537_s3 + $0x10] sm:$0xff]  ;;  %v331_v14 = vpack.c.bf16 %v26_v9, %v25_v8 }
   0x4   :  { %326 = vmatpush3.bf16.msra.mxu0 %v325_v5  ;;  %v118_v13 = vld [vmem:[%s537_s3 + $0x18] sm:$0xff]  ;;  %v349_v15 = vpack.c.bf16 %v116_v11, %v115_v10  ;;  %v27_v16 = vld [vmem:[%s536_s1 + $0x30] sm:$0xff]  ;;  %v119_v19 = vld [vmem:[%s537_s3 + $0x20] sm:$0xff] }
   0x5   :  { %327 = vmatprep.subr.bf16.mxu0 %v379_v0  ;;  %v28_v17 = vld [vmem:[%s536_s1 + $0x38] sm:$0xff]  ;;  %v352_v18 = vpack.c.bf16 %v118_v13, %v117_v12  ;;  %v120_v20 = vld [vmem:[%s537_s3 + $0x28] sm:$0xff]  ;;  %v29_v22 = vld [vmem:[%s536_s1 + $0x40] sm:$0xff] }
   0x6   :  { %350 = vmatpush3.bf16.msra.mxu1 %v349_v15  ;;  %v334_v21 = vpack.c.bf16 %v28_v17, %v27_v16  ;;  %v30_v23 = vld [vmem:[%s536_s1 + $0x48] sm:$0xff]  ;;  %v355_v24 = vpack.c.bf16 %v120_v20, %v119_v19  ;;  %v121_v25 = vld [vmem:[%s537_s3 + $0x30] sm:$0xff]  ;;  %v122_v26 = vld [vmem:[%s537_s3 + $0x38] sm:$0xff] }
   0x7   :  { %351 = vmatprep.subr.bf16.mxu1 %v379_v0  ;;  %v337_v27 = vpack.c.bf16 %v30_v23, %v29_v22  ;;  %v31_v28 = vld [vmem:[%s536_s1 + $0x50] sm:$0xff]  ;;  %v32_v29 = vld [vmem:[%s536_s1 + $0x58] sm:$0xff]  ;;  %v358_v30 = vpack.c.bf16 %v122_v26, %v121_v25  ;;  %v123_v31 = vld [vmem:[%s537_s3 + $0x40] sm:$0xff] }
   0x8   :  { %329 = vmatpush3.bf16.msra.mxu0 %v328_v7  ;;  %v124_v32 = vld [vmem:[%s537_s3 + $0x48] sm:$0xff]  ;;  %v340_v33 = vpack.c.bf16 %v32_v29, %v31_v28  ;;  %v33_v34 = vld [vmem:[%s536_s1 + $0x60] sm:$0xff]  ;;  %v125_v37 = vld [vmem:[%s537_s3 + $0x50] sm:$0xff] }
   0x9   :  { %330 = vmatprep.subr.bf16.mxu0 %v379_v0  ;;  %v34_v35 = vld [vmem:[%s536_s1 + $0x68] sm:$0xff]  ;;  %v361_v36 = vpack.c.bf16 %v124_v32, %v123_v31  ;;  %v126_v38 = vld [vmem:[%s537_s3 + $0x58] sm:$0xff]  ;;  %v35_v40 = vld [vmem:[%s536_s1 + $0x70] sm:$0xff] }
   0xa   :  { %353 = vmatpush3.bf16.msra.mxu1 %v352_v18  ;;  %v343_v39 = vpack.c.bf16 %v34_v35, %v33_v34  ;;  %v36_v41 = vld [vmem:[%s536_s1 + $0x78] sm:$0xff]  ;;  %v364_v42 = vpack.c.bf16 %v126_v38, %v125_v37  ;;  %v127_v43 = vld [vmem:[%s537_s3 + $0x60] sm:$0xff]  ;;  %v128_v44 = vld [vmem:[%s537_s3 + $0x68] sm:$0xff] }
   0xb   :  { %354 = vmatprep.subr.bf16.mxu1 %v379_v0  ;;  %v346_v45 = vpack.c.bf16 %v36_v41, %v35_v40  ;;  %v367_v46 = vpack.c.bf16 %v128_v44, %v127_v43  ;;  %v20_v47 = vld [vmem:[%s538_s0] sm:$0xff]  ;;  %v129_v48 = vld [vmem:[%s537_s3 + $0x70] sm:$0xff]  ;;  %v130_v49 = vld [vmem:[%s537_s3 + $0x78] sm:$0xff] }
   0xc   :  { %332 = vmatpush3.bf16.msra.mxu0 %v331_v14  ;;  %v370_v50 = vpack.c.bf16 %v130_v49, %v129_v48  ;;  %v218_v51 = vld [vmem:[%s539_s2] ss:$0 sm:$0xff] }
   0xd   :  { %333 = vmatprep.subr.bf16.mxu0 %v379_v0  ;;  %v219_v56 = vld [vmem:[%s540_s4] ss:$0 sm:$0xff] }
   0xe   :  { %356 = vmatpush3.bf16.msra.mxu1 %v355_v24 }
   0xf   :  { %357 = vmatprep.subr.bf16.mxu1 %v379_v0 }
  0x10   :  { %335 = vmatpush3.bf16.msra.mxu0 %v334_v21 }
  0x11   :  { %336 = vmatprep.subr.bf16.mxu0 %v379_v0 }
  0x12   :  { %359 = vmatpush3.bf16.msra.mxu1 %v358_v30 }
  0x13   :  { %360 = vmatprep.subr.bf16.mxu1 %v379_v0 }
  0x14   :  { %338 = vmatpush3.bf16.msra.mxu0 %v337_v27 }
  0x15   :  { %339 = vmatprep.subr.bf16.mxu0 %v379_v0 }
  0x16   :  { %362 = vmatpush3.bf16.msra.mxu1 %v361_v36 }
  0x17   :  { %363 = vmatprep.subr.bf16.mxu1 %v379_v0 }
  0x18   :  { %341 = vmatpush3.bf16.msra.mxu0 %v340_v33 }
  0x19   :  { %342 = vmatprep.subr.bf16.mxu0 %v379_v0 }
  0x1a   :  { %365 = vmatpush3.bf16.msra.mxu1 %v364_v42 }
  0x1b   :  { %366 = vmatprep.subr.bf16.mxu1 %v379_v0 }
  0x1c   :  { %344 = vmatpush3.bf16.msra.mxu0 %v343_v39 }
  0x1d   :  { %345 = vmatprep.subr.bf16.mxu0 %v379_v0 }
  0x1e   :  { %368 = vmatpush3.bf16.msra.mxu1 %v367_v46 }
  0x1f   :  { %369 = vmatprep.subr.bf16.mxu1 %v379_v0 }
  0x20   :  { %347 = vmatpush3.bf16.msra.mxu0 %v346_v45 }
  0x22   :  { %371 = vmatpush3.bf16.msra.mxu1 %v370_v50 }
  0x23   :  { %287 = vmatmul.mubr.f32.vlgmr.msra.gmra.mrb[0].mxu0 %v20_v47 }
  0xf6   :  { %v110_v52 = vpop.f32.mrb[0].mxu0 }
  0xf7   :  { %v111_v53 = vadd.f32 %v218_v51, %v110_v52  ;;  %v288_v54 = vpop.f32.mrb[1].mxu0 }
  0xf9   :  { %v114_v55 = vmax.f32 %v111_v53, 0.0 }
  0xfb   :  { %322 = vmatmul.mubr.f32.vlgmr.msra.gmra.mrb[0].mxu1 %v114_v55 }
 0x1ce   :  { %v204_v57 = vpop.f32.mrb[0].mxu1 }
 0x1cf   :  { %v205_v58 = vadd.f32 %v219_v56, %v204_v57  ;;  %v323_v59 = vpop.f32.mrb[1].mxu1 }
 0x1d1   :  { %v208_v60 = vsub.f32 0.0, %v205_v58 }
 0x1d3   :  { %v209_v61 = vmul.f32 1.442695, %v208_v60 }
 0x1d5   :  { %375 = vpow2.f32 %v209_v61 }
 0x1df   :  { %v376_v62 = vpop.eup %375 }
 0x1e0   :  { %v211_v63 = vadd.f32 1.0, %v376_v62 }
 0x1e2   :  { %377 = vrcp.f32 %v211_v63 }
 0x1ec   :  { %v378_v0 = vpop.eup %377 }
 0x1ed   :  { %213 = vst [vmem:[%s541_s5] sm:$0xff] %v378_v0 }

</bundles_post_ra>
